<compile_context>
chip_gen: v7x
topology: tpu7x:2x2x1
jax: 0.10.0
libtpu: 0.0.40
codegen_flags: <defaults>
</compile_context>

<pallas_src>
import jax
import jax.numpy as jnp
from jax.experimental import pallas as pl
from jax.experimental.pallas import tpu as pltpu

SUBLANES = 8     # f32 sublane group
LANES = 128      # lane width


def _round_up(x, m):
    return ((x + m - 1) // m) * m


def _reorder_gates(a, H):
    """PyTorch gate order (i, f, g, o) -> (i, f, o, g) along the 4H axis."""
    return jnp.concatenate([a[:2 * H], a[3 * H:4 * H], a[2 * H:3 * H]], axis=0)


def lstm_kernel(x_ref, wih_ref, whh_ref, b_ref, wfc_ref, bfc_ref,
                out_ref, xw_scr):
    # x_ref: (T*BP, I) bf16, time-major flattened; row t*BP + b <-> (t, b).
    H = whh_ref.shape[0]           # hidden size
    BP = out_ref.shape[0]          # padded batch (multiple of 8)
    T = x_ref.shape[0] // BP       # sequence length

    # --- 1) Hoisted input projection: one bf16 MXU matmul for ALL timesteps.
    # (T*BP, I)bf16 @ (I, 4H)bf16 -> f32, + folded bias, stored in VMEM scratch.
    xw_scr[...] = (jnp.dot(x_ref[...], wih_ref[...],
                           preferred_element_type=jnp.float32)
                   + b_ref[...])

    whh = whh_ref[...]             # (H, 4H) bf16, resident across the loop

    # --- 2) Sequential recurrence; h/c carried as f32 loop values (vregs). ---
    def step(t, carry):
        h, c = carry
        start = pl.multiple_of(t * BP, BP)                    # 8-aligned
        gx = xw_scr[pl.ds(start, BP), :]                      # (BP, 4H), f32
        gates = gx + jnp.dot(h.astype(jnp.bfloat16), whh,
                             preferred_element_type=jnp.float32)
        # Gate columns pre-permuted to (i, f, o, g): sigmoids are contiguous.
        sig = jax.nn.sigmoid(gates[:, :3 * H])                # i, f, o in one go
        g_g = jnp.tanh(gates[:, 3 * H:])
        i_g = sig[:, 0 * H:1 * H]
        f_g = sig[:, 1 * H:2 * H]
        o_g = sig[:, 2 * H:3 * H]
        c_new = f_g * c + i_g * g_g
        h_new = o_g * jnp.tanh(c_new)
        return (h_new, c_new)

    h0 = jnp.zeros((BP, H), jnp.float32)
    c0 = jnp.zeros((BP, H), jnp.float32)
    h_T, _ = jax.lax.fori_loop(0, T, step, (h0, c0), unroll=True)

    # --- 3) Final linear layer on last hidden state (f32, once) + abs. ------
    # Output is lane-dense (BP, Opad) -> single unmasked vst.
    y = (jnp.dot(h_T, wfc_ref[...], preferred_element_type=jnp.float32)
         + bfc_ref[...])
    out_ref[...] = jnp.abs(y).astype(out_ref.dtype)


def lstm_model_forward(x, params):
    """x: (B, T, I) float32 (batch_first, like PyTorch). Returns (B, O)."""
    w_ih, w_hh, b_ih, b_hh, w_fc, b_fc = params
    B, T, I = x.shape
    H = w_hh.shape[1]              # w_hh: (4H, H)
    O = w_fc.shape[0]              # w_fc: (O, H)

    BP = _round_up(max(B, SUBLANES), SUBLANES)   # batch padded to sublane group
    OP = _round_up(O, LANES)                     # fc output padded to lanes

    # Gate reorder so the three sigmoid gates are contiguous (i, f, o | g).
    w_ih_p = _reorder_gates(w_ih, H)             # (4H, I)
    w_hh_p = _reorder_gates(w_hh, H)             # (4H, H)
    bias_p = _reorder_gates(b_ih + b_hh, H)      # (4H,)

    # Batch padding + time-major flattened layout; bf16 MXU operands.
    x_pad = jnp.zeros((BP, T, I), x.dtype).at[:B].set(x)
    x_2d = (jnp.transpose(x_pad, (1, 0, 2))
            .reshape(T * BP, I).astype(jnp.bfloat16))          # (T*BP, I)

    wih_t = jnp.transpose(w_ih_p).astype(jnp.bfloat16)         # (I, 4H)
    whh_t = jnp.transpose(w_hh_p).astype(jnp.bfloat16)         # (H, 4H)
    bias = bias_p.reshape(1, 4 * H).astype(jnp.float32)        # (1, 4H)

    wfc_t = jnp.zeros((H, OP), jnp.float32).at[:, :O].set(jnp.transpose(w_fc))
    bfc = jnp.zeros((1, OP), jnp.float32).at[:, :O].set(b_fc.reshape(1, O))

    # Explicit VMEM budget: operands + lane-padded output + gate scratch,
    # with headroom for double-buffering and compiler-internal scratch.
    est_bytes = (x_2d.size * 2 + wih_t.size * 2 + whh_t.size * 2
                 + bias.size * 4 + wfc_t.size * 4 + bfc.size * 4
                 + BP * OP * 4 + T * BP * 4 * H * 4)
    vmem_limit = int(min(4 * est_bytes + (4 << 20), 64 << 20))

    out = pl.pallas_call(
        lstm_kernel,
        out_shape=jax.ShapeDtypeStruct((BP, OP), jnp.float32),
        grid=(1,),
        in_specs=[
            pl.BlockSpec((T * BP, I), lambda i: (0, 0)),       # x (time-major)
            pl.BlockSpec((I, 4 * H), lambda i: (0, 0)),        # W_ih^T (bf16)
            pl.BlockSpec((H, 4 * H), lambda i: (0, 0)),        # W_hh^T (bf16)
            pl.BlockSpec((1, 4 * H), lambda i: (0, 0)),        # b_ih + b_hh
            pl.BlockSpec((H, OP), lambda i: (0, 0)),           # W_fc^T (padded)
            pl.BlockSpec((1, OP), lambda i: (0, 0)),           # b_fc (padded)
        ],
        out_specs=pl.BlockSpec((BP, OP), lambda i: (0, 0)),
        scratch_shapes=[
            pltpu.VMEM((T * BP, 4 * H), jnp.float32),          # x @ W_ih^T + b
        ],
        compiler_params=pltpu.CompilerParams(
            dimension_semantics=("arbitrary",),
            vmem_limit_bytes=vmem_limit),
    )(x_2d, wih_t, whh_t, bias, wfc_t, bfc)

    return out[:B, :O]


def reference_forward(x, params):
    """Pure-JAX f32 reference matching torch.nn.LSTM + Linear + abs."""
    w_ih, w_hh, b_ih, b_hh, w_fc, b_fc = params
    B, T, I = x.shape
    H = w_hh.shape[1]
    h = jnp.zeros((B, H), jnp.float32)
    c = jnp.zeros((B, H), jnp.float32)
    for t in range(T):
        gates = x[:, t, :] @ w_ih.T + h @ w_hh.T + b_ih + b_hh
        i_g = jax.nn.sigmoid(gates[:, 0 * H:1 * H])
        f_g = jax.nn.sigmoid(gates[:, 1 * H:2 * H])
        g_g = jnp.tanh(gates[:, 2 * H:3 * H])
        o_g = jax.nn.sigmoid(gates[:, 3 * H:4 * H])
        c = f_g * c + i_g * g_g
        h = o_g * jnp.tanh(c)
    return jnp.abs(h @ w_fc.T + b_fc)


def init_params(key, input_size, hidden_size, output_size):
    """Deterministic init, PyTorch-style uniform(-1/sqrt(H), 1/sqrt(H))."""
    ks = jax.random.split(key, 6)
    bound = 1.0 / jnp.sqrt(jnp.float32(hidden_size))
    u = lambda k, shape: jax.random.uniform(k, shape, jnp.float32, -bound, bound)
    w_ih = u(ks[0], (4 * hidden_size, input_size))
    w_hh = u(ks[1], (4 * hidden_size, hidden_size))
    b_ih = u(ks[2], (4 * hidden_size,))
    b_hh = u(ks[3], (4 * hidden_size,))
    w_fc = u(ks[4], (output_size, hidden_size))
    b_fc = u(ks[5], (output_size,))
    return (w_ih, w_hh, b_ih, b_hh, w_fc, b_fc)


if __name__ == "__main__":
    B, T = 2, 8
    input_size, hidden_size, output_size = 16, 32, 8

    key = jax.random.PRNGKey(0)
    kx, kp = jax.random.split(key)
    x = jax.random.normal(kx, (B, T, input_size), jnp.float32)
    params = init_params(kp, input_size, hidden_size, output_size)

    out = jax.block_until_ready(lstm_model_forward(x, params))
    ref = reference_forward(x, params)

    assert out.shape == (B, output_size)
    # bf16 MXU operands (f32 accumulation / gate math) -> bf16-level tolerance.
    assert jnp.allclose(out, ref, atol=2e-2, rtol=2e-2), (out, ref)
    print("KERNEL_OK")
</pallas_src>

<mosaic_0001>
module attributes {stable_mosaic.version = 11 : i64} {
  func.func @lstm_kernel(%arg0: i32, %arg1: memref<64x16xbf16, #tpu.memory_space<vmem>>, %arg2: memref<16x128xbf16, #tpu.memory_space<vmem>>, %arg3: memref<32x128xbf16, #tpu.memory_space<vmem>>, %arg4: memref<1x128xf32, #tpu.memory_space<vmem>>, %arg5: memref<32x128xf32, #tpu.memory_space<vmem>>, %arg6: memref<1x128xf32, #tpu.memory_space<vmem>>, %arg7: memref<8x128xf32, #tpu.memory_space<vmem>>, %arg8: memref<64x128xf32, #tpu.memory_space<vmem>>) attributes {dimension_semantics = [#tpu.dimension_semantics<arbitrary>], iteration_bounds = array<i64: 1>, scalar_prefetch = 0 : i64, scratch_operands = 1 : i64, tpu.core_type = #tpu.core_type<tc>, window_params = [{pipeline_mode = #tpu.pipeline_mode<synchronous>, transform_indices = @transform_0, window_bounds = array<i64: 64, 16>}, {pipeline_mode = #tpu.pipeline_mode<synchronous>, transform_indices = @transform_1, window_bounds = array<i64: 16, 128>}, {pipeline_mode = #tpu.pipeline_mode<synchronous>, transform_indices = @transform_2, window_bounds = array<i64: 32, 128>}, {pipeline_mode = #tpu.pipeline_mode<synchronous>, transform_indices = @transform_3, window_bounds = array<i64: 1, 128>}, {pipeline_mode = #tpu.pipeline_mode<synchronous>, transform_indices = @transform_4, window_bounds = array<i64: 32, 128>}, {pipeline_mode = #tpu.pipeline_mode<synchronous>, transform_indices = @transform_5, window_bounds = array<i64: 1, 128>}, {pipeline_mode = #tpu.pipeline_mode<synchronous>, transform_indices = @transform_6, window_bounds = array<i64: 8, 128>}]} {
    %c0 = arith.constant 0 : index
    %c0_0 = arith.constant 0 : index
    %0 = vector.load %arg1[%c0, %c0_0] : memref<64x16xbf16, #tpu.memory_space<vmem>>, vector<64x16xbf16>
    %c0_1 = arith.constant 0 : index
    %c0_2 = arith.constant 0 : index
    %1 = vector.load %arg2[%c0_1, %c0_2] : memref<16x128xbf16, #tpu.memory_space<vmem>>, vector<16x128xbf16>
    %cst = arith.constant dense<0.000000e+00> : vector<64x128xf32>
    %2 = tpu.matmul %0, %1, %cst {dimension_numbers = #tpu.dot_dimension_numbers<[1], [0], [0], [1], [0, 0, 1, 1], [], []>} : vector<64x16xbf16>, vector<16x128xbf16>, vector<64x128xf32> -> vector<64x128xf32>
    %c0_3 = arith.constant 0 : index
    %c0_4 = arith.constant 0 : index
    %3 = vector.load %arg4[%c0_3, %c0_4] : memref<1x128xf32, #tpu.memory_space<vmem>>, vector<1x128xf32>
    %4 = vector.broadcast %3 : vector<1x128xf32> to vector<64x128xf32>
    %5 = arith.addf %2, %4 : vector<64x128xf32>
    %c0_5 = arith.constant 0 : index
    %c0_6 = arith.constant 0 : index
    %6 = vector.load %arg8[%c0_5, %c0_6] : memref<64x128xf32, #tpu.memory_space<vmem>>, vector<64x128xf32>
    tpu.vector_store %arg8[%c0_5, %c0_6], %5 {strides = array<i32>} : memref<64x128xf32, #tpu.memory_space<vmem>>, vector<64x128xf32>,
    %c0_7 = arith.constant 0 : index
    %c0_8 = arith.constant 0 : index
    %7 = vector.load %arg3[%c0_7, %c0_8] : memref<32x128xbf16, #tpu.memory_space<vmem>>, vector<32x128xbf16>
    %cst_9 = arith.constant 0.000000e+00 : f32
    %8 = vector.broadcast %cst_9 : f32 to vector<8x32xf32>
    %cst_10 = arith.constant 0.000000e+00 : f32
    %9 = vector.broadcast %cst_10 : f32 to vector<8x32xf32>
    %c0_i32 = arith.constant 0 : i32
    %c8_i32 = arith.constant 8 : i32
    %10 = arith.muli %c0_i32, %c8_i32 : i32
    %11 = tpu.assume_multiple %10, 8 : i32
    %12 = arith.index_cast %11 : i32 to index
    %c0_11 = arith.constant 0 : index
    %13 = vector.load %arg8[%12, %c0_11] : memref<64x128xf32, #tpu.memory_space<vmem>>, vector<8x128xf32>
    %14 = arith.truncf %8 : vector<8x32xf32> to vector<8x32xbf16>
    %cst_12 = arith.constant dense<0.000000e+00> : vector<8x128xf32>
    %15 = tpu.matmul %14, %7, %cst_12 {dimension_numbers = #tpu.dot_dimension_numbers<[1], [0], [0], [1], [0, 0, 1, 1], [], []>} : vector<8x32xbf16>, vector<32x128xbf16>, vector<8x128xf32> -> vector<8x128xf32>
    %16 = arith.addf %13, %15 : vector<8x128xf32>
    %17 = vector.extract_strided_slice %16 {offsets = [0, 0], sizes = [8, 96], strides = [1, 1]} : vector<8x128xf32> to vector<8x96xf32>
    %18 = arith.negf %17 : vector<8x96xf32>
    %19 = math.exp %18 : vector<8x96xf32>
    %cst_13 = arith.constant 1.000000e+00 : f32
    %20 = vector.broadcast %cst_13 : f32 to vector<8x96xf32>
    %21 = arith.addf %20, %19 : vector<8x96xf32>
    %22 = arith.divf %20, %21 : vector<8x96xf32>
    %23 = vector.extract_strided_slice %16 {offsets = [0, 96], sizes = [8, 32], strides = [1, 1]} : vector<8x128xf32> to vector<8x32xf32>
    %24 = math.tanh %23 : vector<8x32xf32>
    %25 = vector.extract_strided_slice %22 {offsets = [0, 0], sizes = [8, 32], strides = [1, 1]} : vector<8x96xf32> to vector<8x32xf32>
    %26 = vector.extract_strided_slice %22 {offsets = [0, 32], sizes = [8, 32], strides = [1, 1]} : vector<8x96xf32> to vector<8x32xf32>
    %27 = vector.extract_strided_slice %22 {offsets = [0, 64], sizes = [8, 32], strides = [1, 1]} : vector<8x96xf32> to vector<8x32xf32>
    %28 = arith.mulf %26, %9 : vector<8x32xf32>
    %29 = arith.mulf %25, %24 : vector<8x32xf32>
    %30 = arith.addf %28, %29 : vector<8x32xf32>
    %31 = math.tanh %30 : vector<8x32xf32>
    %32 = arith.mulf %27, %31 : vector<8x32xf32>
    %c1_i32 = arith.constant 1 : i32
    %c8_i32_14 = arith.constant 8 : i32
    %33 = arith.muli %c1_i32, %c8_i32_14 : i32
    %34 = tpu.assume_multiple %33, 8 : i32
    %35 = arith.index_cast %34 : i32 to index
    %c0_15 = arith.constant 0 : index
    %36 = vector.load %arg8[%35, %c0_15] : memref<64x128xf32, #tpu.memory_space<vmem>>, vector<8x128xf32>
    %37 = arith.truncf %32 : vector<8x32xf32> to vector<8x32xbf16>
    %cst_16 = arith.constant dense<0.000000e+00> : vector<8x128xf32>
    %38 = tpu.matmul %37, %7, %cst_16 {dimension_numbers = #tpu.dot_dimension_numbers<[1], [0], [0], [1], [0, 0, 1, 1], [], []>} : vector<8x32xbf16>, vector<32x128xbf16>, vector<8x128xf32> -> vector<8x128xf32>
    %39 = arith.addf %36, %38 : vector<8x128xf32>
    %40 = vector.extract_strided_slice %39 {offsets = [0, 0], sizes = [8, 96], strides = [1, 1]} : vector<8x128xf32> to vector<8x96xf32>
    %41 = arith.negf %40 : vector<8x96xf32>
    %42 = math.exp %41 : vector<8x96xf32>
    %cst_17 = arith.constant 1.000000e+00 : f32
    %43 = vector.broadcast %cst_17 : f32 to vector<8x96xf32>
    %44 = arith.addf %43, %42 : vector<8x96xf32>
    %45 = arith.divf %43, %44 : vector<8x96xf32>
    %46 = vector.extract_strided_slice %39 {offsets = [0, 96], sizes = [8, 32], strides = [1, 1]} : vector<8x128xf32> to vector<8x32xf32>
    %47 = math.tanh %46 : vector<8x32xf32>
    %48 = vector.extract_strided_slice %45 {offsets = [0, 0], sizes = [8, 32], strides = [1, 1]} : vector<8x96xf32> to vector<8x32xf32>
    %49 = vector.extract_strided_slice %45 {offsets = [0, 32], sizes = [8, 32], strides = [1, 1]} : vector<8x96xf32> to vector<8x32xf32>
    %50 = vector.extract_strided_slice %45 {offsets = [0, 64], sizes = [8, 32], strides = [1, 1]} : vector<8x96xf32> to vector<8x32xf32>
    %51 = arith.mulf %49, %30 : vector<8x32xf32>
    %52 = arith.mulf %48, %47 : vector<8x32xf32>
    %53 = arith.addf %51, %52 : vector<8x32xf32>
    %54 = math.tanh %53 : vector<8x32xf32>
    %55 = arith.mulf %50, %54 : vector<8x32xf32>
    %c2_i32 = arith.constant 2 : i32
    %c8_i32_18 = arith.constant 8 : i32
    %56 = arith.muli %c2_i32, %c8_i32_18 : i32
    %57 = tpu.assume_multiple %56, 8 : i32
    %58 = arith.index_cast %57 : i32 to index
    %c0_19 = arith.constant 0 : index
    %59 = vector.load %arg8[%58, %c0_19] : memref<64x128xf32, #tpu.memory_space<vmem>>, vector<8x128xf32>
    %60 = arith.truncf %55 : vector<8x32xf32> to vector<8x32xbf16>
    %cst_20 = arith.constant dense<0.000000e+00> : vector<8x128xf32>
    %61 = tpu.matmul %60, %7, %cst_20 {dimension_numbers = #tpu.dot_dimension_numbers<[1], [0], [0], [1], [0, 0, 1, 1], [], []>} : vector<8x32xbf16>, vector<32x128xbf16>, vector<8x128xf32> -> vector<8x128xf32>
    %62 = arith.addf %59, %61 : vector<8x128xf32>
    %63 = vector.extract_strided_slice %62 {offsets = [0, 0], sizes = [8, 96], strides = [1, 1]} : vector<8x128xf32> to vector<8x96xf32>
    %64 = arith.negf %63 : vector<8x96xf32>
    %65 = math.exp %64 : vector<8x96xf32>
    %cst_21 = arith.constant 1.000000e+00 : f32
    %66 = vector.broadcast %cst_21 : f32 to vector<8x96xf32>
    %67 = arith.addf %66, %65 : vector<8x96xf32>
    %68 = arith.divf %66, %67 : vector<8x96xf32>
    %69 = vector.extract_strided_slice %62 {offsets = [0, 96], sizes = [8, 32], strides = [1, 1]} : vector<8x128xf32> to vector<8x32xf32>
    %70 = math.tanh %69 : vector<8x32xf32>
    %71 = vector.extract_strided_slice %68 {offsets = [0, 0], sizes = [8, 32], strides = [1, 1]} : vector<8x96xf32> to vector<8x32xf32>
    %72 = vector.extract_strided_slice %68 {offsets = [0, 32], sizes = [8, 32], strides = [1, 1]} : vector<8x96xf32> to vector<8x32xf32>
    %73 = vector.extract_strided_slice %68 {offsets = [0, 64], sizes = [8, 32], strides = [1, 1]} : vector<8x96xf32> to vector<8x32xf32>
    %74 = arith.mulf %72, %53 : vector<8x32xf32>
    %75 = arith.mulf %71, %70 : vector<8x32xf32>
    %76 = arith.addf %74, %75 : vector<8x32xf32>
    %77 = math.tanh %76 : vector<8x32xf32>
    %78 = arith.mulf %73, %77 : vector<8x32xf32>
    %c3_i32 = arith.constant 3 : i32
    %c8_i32_22 = arith.constant 8 : i32
    %79 = arith.muli %c3_i32, %c8_i32_22 : i32
    %80 = tpu.assume_multiple %79, 8 : i32
    %81 = arith.index_cast %80 : i32 to index
    %c0_23 = arith.constant 0 : index
    %82 = vector.load %arg8[%81, %c0_23] : memref<64x128xf32, #tpu.memory_space<vmem>>, vector<8x128xf32>
    %83 = arith.truncf %78 : vector<8x32xf32> to vector<8x32xbf16>
    %cst_24 = arith.constant dense<0.000000e+00> : vector<8x128xf32>
    %84 = tpu.matmul %83, %7, %cst_24 {dimension_numbers = #tpu.dot_dimension_numbers<[1], [0], [0], [1], [0, 0, 1, 1], [], []>} : vector<8x32xbf16>, vector<32x128xbf16>, vector<8x128xf32> -> vector<8x128xf32>
    %85 = arith.addf %82, %84 : vector<8x128xf32>
    %86 = vector.extract_strided_slice %85 {offsets = [0, 0], sizes = [8, 96], strides = [1, 1]} : vector<8x128xf32> to vector<8x96xf32>
    %87 = arith.negf %86 : vector<8x96xf32>
    %88 = math.exp %87 : vector<8x96xf32>
    %cst_25 = arith.constant 1.000000e+00 : f32
    %89 = vector.broadcast %cst_25 : f32 to vector<8x96xf32>
    %90 = arith.addf %89, %88 : vector<8x96xf32>
    %91 = arith.divf %89, %90 : vector<8x96xf32>
    %92 = vector.extract_strided_slice %85 {offsets = [0, 96], sizes = [8, 32], strides = [1, 1]} : vector<8x128xf32> to vector<8x32xf32>
    %93 = math.tanh %92 : vector<8x32xf32>
    %94 = vector.extract_strided_slice %91 {offsets = [0, 0], sizes = [8, 32], strides = [1, 1]} : vector<8x96xf32> to vector<8x32xf32>
    %95 = vector.extract_strided_slice %91 {offsets = [0, 32], sizes = [8, 32], strides = [1, 1]} : vector<8x96xf32> to vector<8x32xf32>
    %96 = vector.extract_strided_slice %91 {offsets = [0, 64], sizes = [8, 32], strides = [1, 1]} : vector<8x96xf32> to vector<8x32xf32>
    %97 = arith.mulf %95, %76 : vector<8x32xf32>
    %98 = arith.mulf %94, %93 : vector<8x32xf32>
    %99 = arith.addf %97, %98 : vector<8x32xf32>
    %100 = math.tanh %99 : vector<8x32xf32>
    %101 = arith.mulf %96, %100 : vector<8x32xf32>
    %c4_i32 = arith.constant 4 : i32
    %c8_i32_26 = arith.constant 8 : i32
    %102 = arith.muli %c4_i32, %c8_i32_26 : i32
    %103 = tpu.assume_multiple %102, 8 : i32
    %104 = arith.index_cast %103 : i32 to index
    %c0_27 = arith.constant 0 : index
    %105 = vector.load %arg8[%104, %c0_27] : memref<64x128xf32, #tpu.memory_space<vmem>>, vector<8x128xf32>
    %106 = arith.truncf %101 : vector<8x32xf32> to vector<8x32xbf16>
    %cst_28 = arith.constant dense<0.000000e+00> : vector<8x128xf32>
    %107 = tpu.matmul %106, %7, %cst_28 {dimension_numbers = #tpu.dot_dimension_numbers<[1], [0], [0], [1], [0, 0, 1, 1], [], []>} : vector<8x32xbf16>, vector<32x128xbf16>, vector<8x128xf32> -> vector<8x128xf32>
    %108 = arith.addf %105, %107 : vector<8x128xf32>
    %109 = vector.extract_strided_slice %108 {offsets = [0, 0], sizes = [8, 96], strides = [1, 1]} : vector<8x128xf32> to vector<8x96xf32>
    %110 = arith.negf %109 : vector<8x96xf32>
    %111 = math.exp %110 : vector<8x96xf32>
    %cst_29 = arith.constant 1.000000e+00 : f32
    %112 = vector.broadcast %cst_29 : f32 to vector<8x96xf32>
    %113 = arith.addf %112, %111 : vector<8x96xf32>
    %114 = arith.divf %112, %113 : vector<8x96xf32>
    %115 = vector.extract_strided_slice %108 {offsets = [0, 96], sizes = [8, 32], strides = [1, 1]} : vector<8x128xf32> to vector<8x32xf32>
    %116 = math.tanh %115 : vector<8x32xf32>
    %117 = vector.extract_strided_slice %114 {offsets = [0, 0], sizes = [8, 32], strides = [1, 1]} : vector<8x96xf32> to vector<8x32xf32>
    %118 = vector.extract_strided_slice %114 {offsets = [0, 32], sizes = [8, 32], strides = [1, 1]} : vector<8x96xf32> to vector<8x32xf32>
    %119 = vector.extract_strided_slice %114 {offsets = [0, 64], sizes = [8, 32], strides = [1, 1]} : vector<8x96xf32> to vector<8x32xf32>
    %120 = arith.mulf %118, %99 : vector<8x32xf32>
    %121 = arith.mulf %117, %116 : vector<8x32xf32>
    %122 = arith.addf %120, %121 : vector<8x32xf32>
    %123 = math.tanh %122 : vector<8x32xf32>
    %124 = arith.mulf %119, %123 : vector<8x32xf32>
    %c5_i32 = arith.constant 5 : i32
    %c8_i32_30 = arith.constant 8 : i32
    %125 = arith.muli %c5_i32, %c8_i32_30 : i32
    %126 = tpu.assume_multiple %125, 8 : i32
    %127 = arith.index_cast %126 : i32 to index
    %c0_31 = arith.constant 0 : index
    %128 = vector.load %arg8[%127, %c0_31] : memref<64x128xf32, #tpu.memory_space<vmem>>, vector<8x128xf32>
    %129 = arith.truncf %124 : vector<8x32xf32> to vector<8x32xbf16>
    %cst_32 = arith.constant dense<0.000000e+00> : vector<8x128xf32>
    %130 = tpu.matmul %129, %7, %cst_32 {dimension_numbers = #tpu.dot_dimension_numbers<[1], [0], [0], [1], [0, 0, 1, 1], [], []>} : vector<8x32xbf16>, vector<32x128xbf16>, vector<8x128xf32> -> vector<8x128xf32>
    %131 = arith.addf %128, %130 : vector<8x128xf32>
    %132 = vector.extract_strided_slice %131 {offsets = [0, 0], sizes = [8, 96], strides = [1, 1]} : vector<8x128xf32> to vector<8x96xf32>
    %133 = arith.negf %132 : vector<8x96xf32>
    %134 = math.exp %133 : vector<8x96xf32>
    %cst_33 = arith.constant 1.000000e+00 : f32
    %135 = vector.broadcast %cst_33 : f32 to vector<8x96xf32>
    %136 = arith.addf %135, %134 : vector<8x96xf32>
    %137 = arith.divf %135, %136 : vector<8x96xf32>
    %138 = vector.extract_strided_slice %131 {offsets = [0, 96], sizes = [8, 32], strides = [1, 1]} : vector<8x128xf32> to vector<8x32xf32>
    %139 = math.tanh %138 : vector<8x32xf32>
    %140 = vector.extract_strided_slice %137 {offsets = [0, 0], sizes = [8, 32], strides = [1, 1]} : vector<8x96xf32> to vector<8x32xf32>
    %141 = vector.extract_strided_slice %137 {offsets = [0, 32], sizes = [8, 32], strides = [1, 1]} : vector<8x96xf32> to vector<8x32xf32>
    %142 = vector.extract_strided_slice %137 {offsets = [0, 64], sizes = [8, 32], strides = [1, 1]} : vector<8x96xf32> to vector<8x32xf32>
    %143 = arith.mulf %141, %122 : vector<8x32xf32>
    %144 = arith.mulf %140, %139 : vector<8x32xf32>
    %145 = arith.addf %143, %144 : vector<8x32xf32>
    %146 = math.tanh %145 : vector<8x32xf32>
    %147 = arith.mulf %142, %146 : vector<8x32xf32>
    %c6_i32 = arith.constant 6 : i32
    %c8_i32_34 = arith.constant 8 : i32
    %148 = arith.muli %c6_i32, %c8_i32_34 : i32
    %149 = tpu.assume_multiple %148, 8 : i32
    %150 = arith.index_cast %149 : i32 to index
    %c0_35 = arith.constant 0 : index
    %151 = vector.load %arg8[%150, %c0_35] : memref<64x128xf32, #tpu.memory_space<vmem>>, vector<8x128xf32>
    %152 = arith.truncf %147 : vector<8x32xf32> to vector<8x32xbf16>
    %cst_36 = arith.constant dense<0.000000e+00> : vector<8x128xf32>
    %153 = tpu.matmul %152, %7, %cst_36 {dimension_numbers = #tpu.dot_dimension_numbers<[1], [0], [0], [1], [0, 0, 1, 1], [], []>} : vector<8x32xbf16>, vector<32x128xbf16>, vector<8x128xf32> -> vector<8x128xf32>
    %154 = arith.addf %151, %153 : vector<8x128xf32>
    %155 = vector.extract_strided_slice %154 {offsets = [0, 0], sizes = [8, 96], strides = [1, 1]} : vector<8x128xf32> to vector<8x96xf32>
    %156 = arith.negf %155 : vector<8x96xf32>
    %157 = math.exp %156 : vector<8x96xf32>
    %cst_37 = arith.constant 1.000000e+00 : f32
    %158 = vector.broadcast %cst_37 : f32 to vector<8x96xf32>
    %159 = arith.addf %158, %157 : vector<8x96xf32>
    %160 = arith.divf %158, %159 : vector<8x96xf32>
    %161 = vector.extract_strided_slice %154 {offsets = [0, 96], sizes = [8, 32], strides = [1, 1]} : vector<8x128xf32> to vector<8x32xf32>
    %162 = math.tanh %161 : vector<8x32xf32>
    %163 = vector.extract_strided_slice %160 {offsets = [0, 0], sizes = [8, 32], strides = [1, 1]} : vector<8x96xf32> to vector<8x32xf32>
    %164 = vector.extract_strided_slice %160 {offsets = [0, 32], sizes = [8, 32], strides = [1, 1]} : vector<8x96xf32> to vector<8x32xf32>
    %165 = vector.extract_strided_slice %160 {offsets = [0, 64], sizes = [8, 32], strides = [1, 1]} : vector<8x96xf32> to vector<8x32xf32>
    %166 = arith.mulf %164, %145 : vector<8x32xf32>
    %167 = arith.mulf %163, %162 : vector<8x32xf32>
    %168 = arith.addf %166, %167 : vector<8x32xf32>
    %169 = math.tanh %168 : vector<8x32xf32>
    %170 = arith.mulf %165, %169 : vector<8x32xf32>
    %c7_i32 = arith.constant 7 : i32
    %c8_i32_38 = arith.constant 8 : i32
    %171 = arith.muli %c7_i32, %c8_i32_38 : i32
    %172 = tpu.assume_multiple %171, 8 : i32
    %173 = arith.index_cast %172 : i32 to index
    %c0_39 = arith.constant 0 : index
    %174 = vector.load %arg8[%173, %c0_39] : memref<64x128xf32, #tpu.memory_space<vmem>>, vector<8x128xf32>
    %175 = arith.truncf %170 : vector<8x32xf32> to vector<8x32xbf16>
    %cst_40 = arith.constant dense<0.000000e+00> : vector<8x128xf32>
    %176 = tpu.matmul %175, %7, %cst_40 {dimension_numbers = #tpu.dot_dimension_numbers<[1], [0], [0], [1], [0, 0, 1, 1], [], []>} : vector<8x32xbf16>, vector<32x128xbf16>, vector<8x128xf32> -> vector<8x128xf32>
    %177 = arith.addf %174, %176 : vector<8x128xf32>
    %178 = vector.extract_strided_slice %177 {offsets = [0, 0], sizes = [8, 96], strides = [1, 1]} : vector<8x128xf32> to vector<8x96xf32>
    %179 = arith.negf %178 : vector<8x96xf32>
    %180 = math.exp %179 : vector<8x96xf32>
    %cst_41 = arith.constant 1.000000e+00 : f32
    %181 = vector.broadcast %cst_41 : f32 to vector<8x96xf32>
    %182 = arith.addf %181, %180 : vector<8x96xf32>
    %183 = arith.divf %181, %182 : vector<8x96xf32>
    %184 = vector.extract_strided_slice %177 {offsets = [0, 96], sizes = [8, 32], strides = [1, 1]} : vector<8x128xf32> to vector<8x32xf32>
    %185 = math.tanh %184 : vector<8x32xf32>
    %186 = vector.extract_strided_slice %183 {offsets = [0, 0], sizes = [8, 32], strides = [1, 1]} : vector<8x96xf32> to vector<8x32xf32>
    %187 = vector.extract_strided_slice %183 {offsets = [0, 32], sizes = [8, 32], strides = [1, 1]} : vector<8x96xf32> to vector<8x32xf32>
    %188 = vector.extract_strided_slice %183 {offsets = [0, 64], sizes = [8, 32], strides = [1, 1]} : vector<8x96xf32> to vector<8x32xf32>
    %189 = arith.mulf %187, %168 : vector<8x32xf32>
    %190 = arith.mulf %186, %185 : vector<8x32xf32>
    %191 = arith.addf %189, %190 : vector<8x32xf32>
    %192 = math.tanh %191 : vector<8x32xf32>
    %193 = arith.mulf %188, %192 : vector<8x32xf32>
    %c8_i32_42 = arith.constant 8 : i32
    %c0_43 = arith.constant 0 : index
    %c0_44 = arith.constant 0 : index
    %194 = vector.load %arg5[%c0_43, %c0_44] : memref<32x128xf32, #tpu.memory_space<vmem>>, vector<32x128xf32>
    %cst_45 = arith.constant dense<0.000000e+00> : vector<8x128xf32>
    %195 = tpu.matmul %193, %194, %cst_45 {dimension_numbers = #tpu.dot_dimension_numbers<[1], [0], [0], [1], [0, 0, 1, 1], [], []>} : vector<8x32xf32>, vector<32x128xf32>, vector<8x128xf32> -> vector<8x128xf32>
    %c0_46 = arith.constant 0 : index
    %c0_47 = arith.constant 0 : index
    %196 = vector.load %arg6[%c0_46, %c0_47] : memref<1x128xf32, #tpu.memory_space<vmem>>, vector<1x128xf32>
    %197 = vector.broadcast %196 : vector<1x128xf32> to vector<8x128xf32>
    %198 = arith.addf %195, %197 : vector<8x128xf32>
    %199 = math.absf %198 : vector<8x128xf32>
    %c0_48 = arith.constant 0 : index
    %c0_49 = arith.constant 0 : index
    %200 = vector.load %arg7[%c0_48, %c0_49] : memref<8x128xf32, #tpu.memory_space<vmem>>, vector<8x128xf32>
    tpu.vector_store %arg7[%c0_48, %c0_49], %199 {strides = array<i32>} : memref<8x128xf32, #tpu.memory_space<vmem>>, vector<8x128xf32>,
    return
  }
  func.func @transform_0(%arg0: i32) -> (i32, i32) {
    %c0_i32 = arith.constant 0 : i32
    %c0_i32_0 = arith.constant 0 : i32
    %c0_i32_1 = arith.constant 0 : i32
    return %c0_i32, %c0_i32_0 : i32, i32
  }
  func.func @transform_1(%arg0: i32) -> (i32, i32) {
    %c0_i32 = arith.constant 0 : i32
    %c0_i32_0 = arith.constant 0 : i32
    %c0_i32_1 = arith.constant 0 : i32
    return %c0_i32, %c0_i32_0 : i32, i32
  }
  func.func @transform_2(%arg0: i32) -> (i32, i32) {
    %c0_i32 = arith.constant 0 : i32
    %c0_i32_0 = arith.constant 0 : i32
    %c0_i32_1 = arith.constant 0 : i32
    return %c0_i32, %c0_i32_0 : i32, i32
  }
  func.func @transform_3(%arg0: i32) -> (i32, i32) {
    %c0_i32 = arith.constant 0 : i32
    %c0_i32_0 = arith.constant 0 : i32
    %c0_i32_1 = arith.constant 0 : i32
    return %c0_i32, %c0_i32_0 : i32, i32
  }
  func.func @transform_4(%arg0: i32) -> (i32, i32) {
    %c0_i32 = arith.constant 0 : i32
    %c0_i32_0 = arith.constant 0 : i32
    %c0_i32_1 = arith.constant 0 : i32
    return %c0_i32, %c0_i32_0 : i32, i32
  }
  func.func @transform_5(%arg0: i32) -> (i32, i32) {
    %c0_i32 = arith.constant 0 : i32
    %c0_i32_0 = arith.constant 0 : i32
    %c0_i32_1 = arith.constant 0 : i32
    return %c0_i32, %c0_i32_0 : i32, i32
  }
  func.func @transform_6(%arg0: i32) -> (i32, i32) {
    %c0_i32 = arith.constant 0 : i32
    %c0_i32_0 = arith.constant 0 : i32
    %c0_i32_1 = arith.constant 0 : i32
    return %c0_i32, %c0_i32_0 : i32, i32
  }
}

</mosaic_0001>

<bundles_post_ra>
// kernel: tpu_custom_call.1
= control target key start
LH: loop header
LB: loop body
LE: loop exit
PB: predicated region body
PF: predicated region fallthrough
CT: control target
= control target key end

     0   :  { %11 = vsyncpa [#allocation4], 0  ;;  %s1389_s0 = inlined_call_operand.vmem [shape: bf16[64,16], index: 0, kind: input, shape index: {}]   ;;  %s1390_s1 = inlined_call_operand.hbm [shape: bf16[16,128], index: 1, kind: input, shape index: {}]   ;;  %s1391_s2 = inlined_call_operand.vmem [shape: bf16[32,128], index: 2, kind: input, shape index: {}]   ;;  %s1392_s3 = inlined_call_operand.vmem [shape: f32[1,128], index: 3, kind: input, shape index: {}]   ;;  %s1393_s4 = inlined_call_operand.vmem [shape: f32[32,128], index: 4, kind: input, shape index: {}]   ;;  %s1394_s5 = inlined_call_operand.vmem [shape: f32[1,128], index: 5, kind: input, shape index: {}]   ;;  %s1395_s6 = inlined_call_operand.hbm [shape: f32[8,128], index: 6, kind: output, shape index: {}]  }
   0x1   :  { %12 = vsyncpa [#allocation5], 0  ;;  %s1157_s21 = smov [#allocation3]   ;;  %s1109_s25 = scalar_lea.hbm %s1390_s1, 128 }
   0x2   :  { %s20_s22 = sshll.u32 %s1157_s21, 4  ;;  %p1110_p0 = scmp.ne.s32.totalorder %s1390_s1, %s1109_s25  ;;  %s21_s22 = int_to_ptr.vmem [resolvable:$true] %s20_s22 }
   0x3   :  { %p1113_p1 = scmp.lt.u32.totalorder %s1109_s25, %s1390_s1 }
   0x5   :  { %p1115_p2 = pnand %p1113_p1, %p1110_p0 }
   0x7   :  { %1118 = shalt.err (!%p1115_p2)
}
   0x8   :  { %s1119_s30 = scalar_lea.vmem %s21_s22, 128  ;;  %p1124_p4 = scmp.lt.s32.totalorder %s21_s22, %s21_s22 }
   0x9   :  { %p1120_p3 = scmp.ne.s32.totalorder %s21_s22, %s1119_s30  ;;  %p1125_p5 = scmp.lt.s32.totalorder %s1119_s30, %s1119_s30 }
   0xb   :  { %p1126_p6 = por %p1125_p5, %p1124_p4 }
   0xd   :  { %p1127_p7 = pnand %p1126_p6, %p1120_p3 }
   0xf   :  { %1130 = shalt.err (!%p1127_p7)
}
  0x10   :  { %s1158_s7 = smov 64   ;;  %s1159_s8 = smov 4  }
  0x11   :  { %26 = dma.hbm_to_vmem [thread:$0]  %s1390_s1, 128, %s21_s22, [#allocation4], %s1158_s7, %s1158_s7, %s1159_s8  }
  0x12   :  { %1153 = dma.done.wait [#allocation4], 128  }
  0x13   :  { %1154 = vsyncadd [#allocation4], 4294967168  ;;  %v1160_v0 = vmov 0.0   ;;  %vm1161_vm0 = vmmov 0   ;;  %v1038_v1 = vld [vmem:[#allocation3] sm:$0xff]   ;;  %vm82_vm1 = vcmask 130048  }
  0x14   :  { %948 = vmatprep.subr.bf16.mxu1 %v1160_v0  ;;  %952 = vmatprep.mubr.msk.bf16.mxu1 %vm1161_vm0, %v1160_v0  ;;  %v1221_v2 = vld [vmem:[%s1391_s2] sm:$0xff]   ;;  %v1041_v4 = vld [vmem:[%s1389_s0 + $0x8] sm:$0xff]   ;;  %v1162_v6 = vmov 0   ;;  %s1163_s19 = smov 32   ;;  %vm185_vm2 = vcmask 261120   ;;  %v1043_v49 = vld [vmem:[%s1389_s0 + $0x10] sm:$0xff]  }
  0x15   :  { %938 = vmatprep.subr.bf16.mxu0 %v1038_v1  ;;  %v1040_v3 = vld [vmem:[%s1389_s0] sm:$0xff]   ;;  %949 = vmatpush3.bf16.msra.mxu1 %v1221_v2  ;;  %v1235_v5 = vld [vmem:[%s1391_s2 + $0x8] sm:$0xff]   ;;  %v1044_v50 = vld [vmem:[%s1389_s0 + $0x18] sm:$0xff]  }
  0x16   :  { %939 = vmatpush3.bf16.msra.mxu0 %v1038_v1  ;;  %940 = vmatprep.mubr.msk.bf16.mxu0 %vm82_vm1, %v1040_v3  ;;  %v1254_v7 = vld [vmem:[%s1392_s3] ss:$0 sm:$0xff] }
  0x17   :  { %950 = vmatprep.subr.bf16.mxu1 %v1160_v0  ;;  %964 = vmatprep.subr.bf16.mxu0 %v1160_v0 }
  0x19   :  { %941 = vmatmul.mubr.msk.bf16.vlgmr.msra.gmra.mrb[0].mxu0 %vm82_vm1, %v1041_v4  ;;  %951 = vmatpush3.bf16.msra.mxu1 %v1235_v5 }
  0x1a   :  { %965 = vmatpush3.bf16.msra.mxu0 %v1221_v2  ;;  %956 = vmatprep.subr.bf16.mxu1 %v1160_v0 }
  0x1b   :  { %966 = vmatprep.subr.bf16.mxu0 %v1160_v0  ;;  %944 = vmatprep.mubr.msk.bf16.mxu0 %vm82_vm1, %v1043_v49 }
  0x1c   :  { %953 = vmatmul.mubr.bf16.vlgmr.msra.gmra.mrb[0].mxu1 %v1162_v6 }
  0x1d   :  { %957 = vmatpush3.bf16.msra.mxu1 %v1221_v2  ;;  %960 = vmatprep.mubr.msk.bf16.mxu1 %vm1161_vm0, %v1160_v0 }
  0x1e   :  { %958 = vmatprep.subr.bf16.mxu1 %v1160_v0  ;;  %967 = vmatpush3.bf16.msra.mxu0 %v1235_v5 }
  0x1f   :  { %980 = vmatprep.subr.bf16.mxu0 %v1160_v0 }
  0x21   :  { %959 = vmatpush3.bf16.msra.mxu1 %v1235_v5  ;;  %945 = vmatmul.mubr.msk.bf16.gmra.mrb[4].mxu0 %vm82_vm1, %v1044_v50 }
  0x22   :  { %972 = vmatprep.subr.bf16.mxu1 %v1160_v0  ;;  %968 = vmatprep.mubr.msk.bf16.mxu0 %vm1161_vm0, %v1160_v0 }
  0xec   :  { %v1256_v8 = vpop.f32.mrb[0].mxu0 }
  0xed   :  { %v129_v9 = vpop.f32.mrb[1].mxu0  ;;  %v138_v60 = vadd.f32 %v1256_v8, %v1254_v7 }
  0xee   :  { %v130_v10 = vadd.f32 %v1254_v7, %v129_v9  ;;  %v1259_v11 = vpop.f32.mrb[2].mxu0 }
  0xef   :  { %v132_v12 = vpop.f32.mrb[3].mxu0  ;;  %v223_v13 = vpop.f32.mrb[0].mxu1 }
  0xf0   :  { %v229_v14 = vadd.f32 %v223_v13, %v130_v10  ;;  %v954_v15 = vpop.f32.mrb[1].mxu1  ;;  %v133_v33 = vadd.f32 %v1254_v7, %v132_v12 }
  0xf1   :  { %v226_v16 = vpop.f32.mrb[2].mxu1 }
  0xf2   :  { %1045 = vtanh.f32 %v229_v14  ;;  %v955_v17 = vpop.f32.mrb[3].mxu1  ;;  %v887_v19 = vmul.f32 -1.442695, %v229_v14 }
  0xf4   :  { %1047 = vpow2.f32 %v887_v19  ;;  %v1287_v55 = vpop.f32.mrb[4].mxu0 }
  0xf5   :  { %v1289_v56 = vpop.f32.mrb[5].mxu0 }
  0xf6   :  { %v1291_v57 = vpop.f32.mrb[6].mxu0 }
  0xf7   :  { %v1293_v58 = vpop.f32.mrb[7].mxu0 }
  0xfc   :  { %v1046_v18 = vpop.eup %1045 }
  0xfd   :  { %239 = vrot.lane.b32.xlu0 %v1046_v18, %s1163_s19 }
  0xfe   :  { %v1048_v20 = vpop.eup %1047 }
  0xff   :  { %v233_v21 = vadd.f32 1.0, %v1048_v20 }
 0x101   :  { %1049 = vrcp.f32 %v233_v21 }
 0x10b   :  { %v1050_v22 = vpop.eup %1049 }
 0x10c   :  { %v237_v25 = vmul.f32 0.0, %v1050_v22 }
 0x16f   :  { %v240_v23 = vpop.permute.xlu0 %239 }
 0x170   :  { %v242_v24 = vmul.f32 %v1050_v22, %v240_v23 }
 0x172   :  { %244 = vrot.lane.b32.xlu0 %v242_v24, %s1163_s19 }
 0x1e4   :  { %v245_v26 = vpop.permute.xlu0 %244 }
 0x1e5   :  { %v247_v27 = vadd.f32 %v245_v26, %v237_v25 }
 0x1e7   :  { %1051 = vtanh.f32 %v247_v27 }
 0x1f1   :  { %v1052_v28 = vpop.eup %1051 }
 0x1f2   :  { %250 = vrot.lane.b32.xlu1 %v1052_v28, %s1163_s19 }
 0x264   :  { %v251_v29 = vpop.permute.xlu1 %250 }
 0x265   :  { %v253_v30 = vmul.f32 %v1050_v22, %v251_v29  ;;  %v141_v22 = vadd.f32 %v1259_v11, %v1254_v7 }
 0x267   :  { %v256_v31 = vpack.c.bf16 %v253_v30, %v253_v30 }
 0x269   :  { %258 = vrot.lane.b32.xlu1 %v256_v31, %s1158_s7 }
 0x2db   :  { %v259_v32 = vpop.permute.xlu1 %258 }
 0x2dc   :  { %961 = vmatmul.mubr.msk.bf16.vlgmr.msra.gmra.mrb[4].mxu1 %vm185_vm2, %v259_v32 }
 0x2dd   :  { %973 = vmatpush3.bf16.msra.mxu1 %v1221_v2  ;;  %976 = vmatprep.mubr.msk.bf16.mxu1 %vm1161_vm0, %v1160_v0 }
 0x2de   :  { %974 = vmatprep.subr.bf16.mxu1 %v1160_v0 }
 0x2e1   :  { %975 = vmatpush3.bf16.msra.mxu1 %v1235_v5 }
 0x2e2   :  { %988 = vmatprep.subr.bf16.mxu1 %v1160_v0 }
 0x3af   :  { %v297_v34 = vpop.f32.mrb[4].mxu1 }
 0x3b0   :  { %v303_v35 = vadd.f32 %v297_v34, %v133_v33  ;;  %v962_v36 = vpop.f32.mrb[5].mxu1 }
 0x3b1   :  { %v300_v37 = vpop.f32.mrb[6].mxu1 }
 0x3b2   :  { %1053 = vtanh.f32 %v303_v35  ;;  %v963_v38 = vpop.f32.mrb[7].mxu1  ;;  %v889_v40 = vmul.f32 -1.442695, %v303_v35 }
 0x3b4   :  { %1055 = vpow2.f32 %v889_v40 }
 0x3bc   :  { %v1054_v39 = vpop.eup %1053 }
 0x3bd   :  { %313 = vrot.lane.b32.xlu0 %v1054_v39, %s1163_s19 }
 0x3be   :  { %v1056_v41 = vpop.eup %1055 }
 0x3bf   :  { %v307_v42 = vadd.f32 1.0, %v1056_v41 }
 0x3c1   :  { %1057 = vrcp.f32 %v307_v42  ;;  %v146_v42 = vadd.f32 %v1254_v7, %v1289_v56 }
 0x3cb   :  { %v1058_v43 = vpop.eup %1057 }
 0x3cc   :  { %v311_v46 = vmul.f32 %v1058_v43, %v247_v27 }
 0x42f   :  { %v314_v44 = vpop.permute.xlu0 %313 }
 0x430   :  { %v316_v45 = vmul.f32 %v1058_v43, %v314_v44 }
 0x432   :  { %318 = vrot.lane.b32.xlu1 %v316_v45, %s1163_s19 }
 0x4a4   :  { %v319_v47 = vpop.permute.xlu1 %318 }
 0x4a5   :  { %v321_v48 = vadd.f32 %v319_v47, %v311_v46 }
 0x4a7   :  { %1059 = vtanh.f32 %v321_v48 }
 0x4b1   :  { %v1060_v51 = vpop.eup %1059 }
 0x4b2   :  { %324 = vrot.lane.b32.xlu0 %v1060_v51, %s1163_s19 }
 0x524   :  { %v325_v52 = vpop.permute.xlu0 %324 }
 0x525   :  { %v327_v53 = vmul.f32 %v1058_v43, %v325_v52 }
 0x527   :  { %v330_v54 = vpack.c.bf16 %v327_v53, %v327_v53 }
 0x529   :  { %332 = vrot.lane.b32.xlu1 %v330_v54, %s1158_s7 }
 0x59b   :  { %v333_v59 = vpop.permute.xlu1 %332 }
 0x59c   :  { %969 = vmatmul.mubr.msk.bf16.vlgmr.msra.gmra.mrb[8].mxu0 %vm185_vm2, %v333_v59 }
 0x59d   :  { %981 = vmatpush3.bf16.msra.mxu0 %v1221_v2  ;;  %984 = vmatprep.mubr.msk.bf16.mxu0 %vm1161_vm0, %v1160_v0 }
 0x59e   :  { %982 = vmatprep.subr.bf16.mxu0 %v1160_v0 }
 0x5a1   :  { %983 = vmatpush3.bf16.msra.mxu0 %v1235_v5 }
 0x5a2   :  { %996 = vmatprep.subr.bf16.mxu0 %v1160_v0 }
 0x66f   :  { %v371_v61 = vpop.f32.mrb[8].mxu0 }
 0x670   :  { %v377_v62 = vadd.f32 %v371_v61, %v138_v60  ;;  %v970_v63 = vpop.f32.mrb[9].mxu0 }
 0x671   :  { %v374_v1 = vpop.f32.mrb[10].mxu0 }
 0x672   :  { %1061 = vtanh.f32 %v377_v62  ;;  %v971_v3 = vpop.f32.mrb[11].mxu0  ;;  %v891_v6 = vmul.f32 -1.442695, %v377_v62 }
 0x674   :  { %1063 = vpow2.f32 %v891_v6 }
 0x67c   :  { %v1062_v4 = vpop.eup %1061 }
 0x67d   :  { %387 = vrot.lane.b32.xlu0 %v1062_v4, %s1163_s19  ;;  %v149_v4 = vadd.f32 %v1254_v7, %v1293_v58 }
 0x67e   :  { %v1064_v9 = vpop.eup %1063 }
 0x67f   :  { %v381_v10 = vadd.f32 1.0, %v1064_v9 }
 0x681   :  { %1065 = vrcp.f32 %v381_v10 }
 0x68b   :  { %v1066_v12 = vpop.eup %1065 }
 0x68c   :  { %v385_v8 = vmul.f32 %v1066_v12, %v321_v48 }
 0x6ef   :  { %v388_v13 = vpop.permute.xlu0 %387 }
 0x6f0   :  { %v390_v14 = vmul.f32 %v1066_v12, %v388_v13 }
 0x6f2   :  { %392 = vrot.lane.b32.xlu1 %v390_v14, %s1163_s19 }
 0x764   :  { %v393_v15 = vpop.permute.xlu1 %392 }
 0x765   :  { %v395_v16 = vadd.f32 %v393_v15, %v385_v8 }
 0x767   :  { %1067 = vtanh.f32 %v395_v16 }
 0x771   :  { %v1068_v17 = vpop.eup %1067 }
 0x772   :  { %398 = vrot.lane.b32.xlu0 %v1068_v17, %s1163_s19 }
 0x7e4   :  { %v399_v18 = vpop.permute.xlu0 %398 }
 0x7e5   :  { %v401_v19 = vmul.f32 %v1066_v12, %v399_v18 }
 0x7e7   :  { %v404_v20 = vpack.c.bf16 %v401_v19, %v401_v19 }
 0x7e9   :  { %406 = vrot.lane.b32.xlu1 %v404_v20, %s1158_s7 }
 0x85b   :  { %v407_v21 = vpop.permute.xlu1 %406 }
 0x85c   :  { %977 = vmatmul.mubr.msk.bf16.vlgmr.msra.gmra.mrb[8].mxu1 %vm185_vm2, %v407_v21 }
 0x85d   :  { %989 = vmatpush3.bf16.msra.mxu1 %v1221_v2  ;;  %992 = vmatprep.mubr.msk.bf16.mxu1 %vm1161_vm0, %v1160_v0 }
 0x85e   :  { %990 = vmatprep.subr.bf16.mxu1 %v1160_v0 }
 0x861   :  { %991 = vmatpush3.bf16.msra.mxu1 %v1235_v5 }
 0x862   :  { %1004 = vmatprep.subr.bf16.mxu1 %v1160_v0 }
 0x92f   :  { %v445_v23 = vpop.f32.mrb[8].mxu1 }
 0x930   :  { %v451_v24 = vadd.f32 %v445_v23, %v141_v22  ;;  %v978_v25 = vpop.f32.mrb[9].mxu1 }
 0x931   :  { %v448_v26 = vpop.f32.mrb[10].mxu1  ;;  %v154_v25 = vadd.f32 %v1287_v55, %v1254_v7 }
 0x932   :  { %1069 = vtanh.f32 %v451_v24  ;;  %v979_v27 = vpop.f32.mrb[11].mxu1  ;;  %v893_v29 = vmul.f32 -1.442695, %v451_v24 }
 0x934   :  { %1071 = vpow2.f32 %v893_v29 }
 0x93c   :  { %v1070_v28 = vpop.eup %1069 }
 0x93d   :  { %461 = vrot.lane.b32.xlu0 %v1070_v28, %s1163_s19 }
 0x93e   :  { %v1072_v30 = vpop.eup %1071 }
 0x93f   :  { %v455_v31 = vadd.f32 1.0, %v1072_v30 }
 0x941   :  { %1073 = vrcp.f32 %v455_v31 }
 0x94b   :  { %v1074_v32 = vpop.eup %1073 }
 0x94c   :  { %v459_v11 = vmul.f32 %v1074_v32, %v395_v16 }
 0x9af   :  { %v462_v33 = vpop.permute.xlu0 %461 }
 0x9b0   :  { %v464_v34 = vmul.f32 %v1074_v32, %v462_v33 }
 0x9b2   :  { %466 = vrot.lane.b32.xlu1 %v464_v34, %s1163_s19 }
 0xa24   :  { %v467_v35 = vpop.permute.xlu1 %466 }
 0xa25   :  { %v469_v36 = vadd.f32 %v467_v35, %v459_v11 }
 0xa27   :  { %1075 = vtanh.f32 %v469_v36 }
 0xa31   :  { %v1076_v37 = vpop.eup %1075 }
 0xa32   :  { %472 = vrot.lane.b32.xlu0 %v1076_v37, %s1163_s19 }
 0xaa4   :  { %v473_v38 = vpop.permute.xlu0 %472 }
 0xaa5   :  { %v475_v39 = vmul.f32 %v1074_v32, %v473_v38 }
 0xaa7   :  { %v478_v40 = vpack.c.bf16 %v475_v39, %v475_v39 }
 0xaa9   :  { %480 = vrot.lane.b32.xlu1 %v478_v40, %s1158_s7 }
 0xb1b   :  { %v481_v41 = vpop.permute.xlu1 %480 }
 0xb1c   :  { %985 = vmatmul.mubr.msk.bf16.vlgmr.msra.gmra.mrb[12].mxu0 %vm185_vm2, %v481_v41 }
 0xb1d   :  { %997 = vmatpush3.bf16.msra.mxu0 %v1221_v2  ;;  %1000 = vmatprep.mubr.msk.bf16.mxu0 %vm1161_vm0, %v1160_v0 }
 0xb1e   :  { %998 = vmatprep.subr.bf16.mxu0 %v1160_v0 }
 0xb21   :  { %999 = vmatpush3.bf16.msra.mxu0 %v1235_v5 }
 0xbef   :  { %v519_v43 = vpop.f32.mrb[12].mxu0 }
 0xbf0   :  { %v525_v44 = vadd.f32 %v519_v43, %v146_v42  ;;  %v986_v45 = vpop.f32.mrb[13].mxu0  ;;  %v157_v43 = vadd.f32 %v1291_v57, %v1254_v7 }
 0xbf1   :  { %v522_v46 = vpop.f32.mrb[14].mxu0 }
 0xbf2   :  { %1077 = vtanh.f32 %v525_v44  ;;  %v987_v47 = vpop.f32.mrb[15].mxu0  ;;  %v895_v49 = vmul.f32 -1.442695, %v525_v44 }
 0xbf4   :  { %1079 = vpow2.f32 %v895_v49 }
 0xbfc   :  { %v1078_v48 = vpop.eup %1077 }
 0xbfd   :  { %535 = vrot.lane.b32.xlu0 %v1078_v48, %s1163_s19 }
 0xbfe   :  { %v1080_v50 = vpop.eup %1079 }
 0xbff   :  { %v529_v51 = vadd.f32 1.0, %v1080_v50 }
 0xc01   :  { %1081 = vrcp.f32 %v529_v51 }
 0xc0b   :  { %v1082_v52 = vpop.eup %1081 }
 0xc0c   :  { %v533_v56 = vmul.f32 %v1082_v52, %v469_v36 }
 0xc6f   :  { %v536_v53 = vpop.permute.xlu0 %535 }
 0xc70   :  { %v538_v54 = vmul.f32 %v1082_v52, %v536_v53 }
 0xc72   :  { %540 = vrot.lane.b32.xlu1 %v538_v54, %s1163_s19 }
 0xce4   :  { %v541_v59 = vpop.permute.xlu1 %540 }
 0xce5   :  { %v543_v60 = vadd.f32 %v541_v59, %v533_v56 }
 0xce7   :  { %1083 = vtanh.f32 %v543_v60 }
 0xcf1   :  { %v1084_v61 = vpop.eup %1083 }
 0xcf2   :  { %546 = vrot.lane.b32.xlu0 %v1084_v61, %s1163_s19  ;;  %v773_v61 = vld [vmem:[%s1393_s4 + $0x8] sm:$0xff] }
 0xd64   :  { %v547_v62 = vpop.permute.xlu0 %546 }
 0xd65   :  { %v549_v63 = vmul.f32 %v1082_v52, %v547_v62  ;;  %v774_v62 = vld [vmem:[%s1393_s4 + $0x10] sm:$0xff] }
 0xd67   :  { %v552_v1 = vpack.c.bf16 %v549_v63, %v549_v63  ;;  %v1164_v63 = vmov 0.0|0.0  }
 0xd68   :  { %1023 = vmatprep.subr.bf16.mxu0 %v1164_v63 }
 0xd69   :  { %554 = vrot.lane.b32.xlu1 %v552_v1, %s1158_s7 }
 0xddb   :  { %v555_v3 = vpop.permute.xlu1 %554 }
 0xddc   :  { %993 = vmatmul.mubr.msk.bf16.vlgmr.msra.gmra.mrb[12].mxu1 %vm185_vm2, %v555_v3  ;;  %v775_v3 = vld [vmem:[%s1393_s4 + $0x18] sm:$0xff] }
 0xddd   :  { %1005 = vmatpush3.bf16.msra.mxu1 %v1221_v2  ;;  %1008 = vmatprep.mubr.msk.bf16.mxu1 %vm1161_vm0, %v1160_v0 }
 0xdde   :  { %1006 = vmatprep.subr.bf16.mxu1 %v1160_v0 }
 0xde1   :  { %1007 = vmatpush3.bf16.msra.mxu1 %v1235_v5 }
 0xeaf   :  { %v593_v6 = vpop.f32.mrb[12].mxu1 }
 0xeb0   :  { %v599_v9 = vadd.f32 %v593_v6, %v149_v4  ;;  %v994_v10 = vpop.f32.mrb[13].mxu1  ;;  %v1027_v4 = vpack.c.bf16 %v775_v3, %v774_v62 }
 0xeb1   :  { %v596_v12 = vpop.f32.mrb[14].mxu1 }
 0xeb2   :  { %1085 = vtanh.f32 %v599_v9  ;;  %v995_v13 = vpop.f32.mrb[15].mxu1  ;;  %v897_v2 = vmul.f32 -1.442695, %v599_v9 }
 0xeb3   :  { %v902_v13 = vld [vmem:[%s1394_s5] ss:$0 sm:$0xff] }
 0xeb4   :  { %1087 = vpow2.f32 %v897_v2 }
 0xebc   :  { %v1086_v14 = vpop.eup %1085 }
 0xebd   :  { %609 = vrot.lane.b32.xlu0 %v1086_v14, %s1163_s19 }
 0xebe   :  { %v1088_v8 = vpop.eup %1087 }
 0xebf   :  { %v603_v15 = vadd.f32 1.0, %v1088_v8 }
 0xec1   :  { %1089 = vrcp.f32 %v603_v15 }
 0xecb   :  { %v1090_v16 = vpop.eup %1089 }
 0xecc   :  { %v607_v58 = vmul.f32 %v1090_v16, %v543_v60  ;;  %v772_v60 = vld [vmem:[%s1393_s4] sm:$0xff]  ;;  %s1165_s4 = smov [#allocation6]  }
 0xecd   :  { %v1024_v1 = vpack.c.bf16 %v773_v61, %v772_v60  ;;  %s866_s9 = sshll.u32 %s1165_s4, 4  ;;  %s867_s9 = int_to_ptr.vmem [resolvable:$true] %s866_s9 }
 0xece   :  { %s1131_s10 = scalar_lea.vmem %s867_s9, 128  ;;  %p1136_p9 = scmp.lt.s32.totalorder %s867_s9, %s867_s9 }
 0xecf   :  { %p1132_p8 = scmp.ne.s32.totalorder %s867_s9, %s1131_s10  ;;  %p1137_p10 = scmp.lt.s32.totalorder %s1131_s10, %s1131_s10 }
 0xed1   :  { %p1138_p11 = por %p1137_p10, %p1136_p9 }
 0xed3   :  { %p1139_p12 = pnand %p1138_p11, %p1132_p8 }
 0xf2f   :  { %v610_v17 = vpop.permute.xlu0 %609 }
 0xf30   :  { %v612_v5 = vmul.f32 %v1090_v16, %v610_v17 }
 0xf32   :  { %614 = vrot.lane.b32.xlu1 %v612_v5, %s1163_s19 }
 0xfa4   :  { %v615_v18 = vpop.permute.xlu1 %614 }
 0xfa5   :  { %v617_v19 = vadd.f32 %v615_v18, %v607_v58 }
 0xfa7   :  { %1091 = vtanh.f32 %v617_v19 }
 0xfb1   :  { %v1092_v20 = vpop.eup %1091 }
 0xfb2   :  { %620 = vrot.lane.b32.xlu0 %v1092_v20, %s1163_s19 }
0x1024   :  { %v621_v21 = vpop.permute.xlu0 %620 }
0x1025   :  { %v623_v22 = vmul.f32 %v1090_v16, %v621_v21 }
0x1027   :  { %v626_v23 = vpack.c.bf16 %v623_v22, %v623_v22 }
0x1029   :  { %628 = vrot.lane.b32.xlu1 %v626_v23, %s1158_s7 }
0x109b   :  { %v629_v24 = vpop.permute.xlu1 %628 }
0x109c   :  { %1001 = vmatmul.mubr.msk.bf16.vlgmr.msra.gmra.mrb[16].mxu0 %vm185_vm2, %v629_v24 }
0x109d   :  { %1020 = vmatprep.mubr.msk.f32.mxu0 %vm1161_vm0, %v1160_v0  ;;  %1025 = vmatpush3.bf16.msra.mxu0 %v1024_v1 }
0x109e   :  { %1026 = vmatprep.subr.bf16.mxu0 %v1164_v63 }
0x10a1   :  { %1028 = vmatpush3.bf16.msra.mxu0 %v1027_v4 }
0x116f   :  { %v667_v26 = vpop.f32.mrb[16].mxu0 }
0x1170   :  { %v673_v27 = vadd.f32 %v667_v26, %v154_v25  ;;  %v1002_v28 = vpop.f32.mrb[17].mxu0 }
0x1171   :  { %v670_v29 = vpop.f32.mrb[18].mxu0 }
0x1172   :  { %1093 = vtanh.f32 %v673_v27  ;;  %v1003_v30 = vpop.f32.mrb[19].mxu0  ;;  %v899_v32 = vmul.f32 -1.442695, %v673_v27 }
0x1174   :  { %1095 = vpow2.f32 %v899_v32 }
0x117c   :  { %v1094_v31 = vpop.eup %1093 }
0x117d   :  { %683 = vrot.lane.b32.xlu0 %v1094_v31, %s1163_s19 }
0x117e   :  { %v1096_v33 = vpop.eup %1095 }
0x117f   :  { %v677_v34 = vadd.f32 1.0, %v1096_v33 }
0x1181   :  { %1097 = vrcp.f32 %v677_v34 }
0x118b   :  { %v1098_v11 = vpop.eup %1097 }
0x118c   :  { %v681_v55 = vmul.f32 %v1098_v11, %v617_v19 }
0x11ef   :  { %v684_v35 = vpop.permute.xlu0 %683 }
0x11f0   :  { %v686_v0 = vmul.f32 %v1098_v11, %v684_v35 }
0x11f2   :  { %688 = vrot.lane.b32.xlu1 %v686_v0, %s1163_s19 }
0x1264   :  { %v689_v36 = vpop.permute.xlu1 %688 }
0x1265   :  { %v691_v37 = vadd.f32 %v689_v36, %v681_v55 }
0x1267   :  { %1099 = vtanh.f32 %v691_v37 }
0x1271   :  { %v1100_v38 = vpop.eup %1099 }
0x1272   :  { %694 = vrot.lane.b32.xlu0 %v1100_v38, %s1163_s19 }
0x12e4   :  { %v695_v39 = vpop.permute.xlu0 %694 }
0x12e5   :  { %v697_v40 = vmul.f32 %v1098_v11, %v695_v39 }
0x12e7   :  { %v700_v41 = vpack.c.bf16 %v697_v40, %v697_v40 }
0x12e9   :  { %702 = vrot.lane.b32.xlu1 %v700_v41, %s1158_s7 }
0x135b   :  { %v703_v42 = vpop.permute.xlu1 %702 }
0x135c   :  { %1009 = vmatmul.mubr.msk.bf16.vlgmr.msra.gmra.mrb[16].mxu1 %vm185_vm2, %v703_v42 }
0x142f   :  { %v741_v44 = vpop.f32.mrb[16].mxu1 }
0x1430   :  { %v747_v45 = vadd.f32 %v741_v44, %v157_v43  ;;  %v1010_v46 = vpop.f32.mrb[17].mxu1 }
0x1431   :  { %v744_v47 = vpop.f32.mrb[18].mxu1 }
0x1432   :  { %1101 = vtanh.f32 %v747_v45  ;;  %v1011_v48 = vpop.f32.mrb[19].mxu1  ;;  %v901_v50 = vmul.f32 -1.442695, %v747_v45 }
0x1434   :  { %1103 = vpow2.f32 %v901_v50 }
0x143c   :  { %v1102_v49 = vpop.eup %1101 }
0x143d   :  { %757 = vrot.lane.b32.xlu0 %v1102_v49, %s1163_s19 }
0x143e   :  { %v1104_v51 = vpop.eup %1103 }
0x143f   :  { %v751_v52 = vadd.f32 1.0, %v1104_v51 }
0x1441   :  { %1105 = vrcp.f32 %v751_v52 }
0x144b   :  { %v1106_v53 = vpop.eup %1105 }
0x144c   :  { %v755_v7 = vmul.f32 %v1106_v53, %v691_v37 }
0x14af   :  { %v758_v54 = vpop.permute.xlu0 %757 }
0x14b0   :  { %v760_v56 = vmul.f32 %v1106_v53, %v758_v54 }
0x14b2   :  { %762 = vrot.lane.b32.xlu1 %v760_v56, %s1163_s19 }
0x1524   :  { %v763_v57 = vpop.permute.xlu1 %762 }
0x1525   :  { %v765_v59 = vadd.f32 %v763_v57, %v755_v7 }
0x1527   :  { %1107 = vtanh.f32 %v765_v59 }
0x1531   :  { %v1108_v6 = vpop.eup %1107 }
0x1532   :  { %768 = vrot.lane.b32.xlu0 %v1108_v6, %s1163_s19 }
0x15a4   :  { %v769_v9 = vpop.permute.xlu0 %768 }
0x15a5   :  { %v771_v10 = vmul.f32 %v1106_v53, %v769_v9 }
0x15a7   :  { %784 = vrot.lane.b32.xlu1 %v771_v10, %s1158_s7 }
0x1619   :  { %v785_v12 = vpop.permute.xlu1 %784 }
0x161a   :  { %1021 = vmatmul.mubr.msk.f32.vlgmr.msra.gmra.mrb[20].mxu0 %vm185_vm2, %v785_v12 }
0x16ed   :  { %v854_v14 = vpop.f32.mrb[20].mxu0 }
0x16ee   :  { %v855_v2 = vadd.f32 %v902_v13, %v854_v14  ;;  %v1022_v8 = vpop.f32.mrb[21].mxu0 }
0x16f0   :  { %v858_v15 = vand.u32 2147483647, %v855_v2 }
0x16f2   :  { %859 = vst [vmem:[#allocation6] sm:$0xff] %v858_v15 }
0x16f3   :  { %1142 = shalt.err (!%p1139_p12)
}
0x16f4   :  { %s1143_s12 = scalar_lea.hbm %s1395_s6, 128 }
0x16f5   :  { %p1144_p13 = scmp.ne.s32.totalorder %s1395_s6, %s1143_s12  ;;  %p1147_p0 = scmp.lt.u32.totalorder %s1143_s12, %s1395_s6 }
0x16f7   :  { %p1149_p1 = pnand %p1147_p0, %p1144_p13 }
0x16f9   :  { %1152 = shalt.err (!%p1149_p1)
}
0x16fa   :  { %869 = dma.vmem_to_hbm [thread:$0]  %s867_s9, 128, %s1395_s6, [#allocation5]  }
0x16fb   :  { %1155 = dma.done.wait [#allocation5], 128  }
0x16fc   :  { %1156 = vsyncadd [#allocation5], 4294967168 }
0x16fd   :  { %873 = vsyncpa [#allocation4], 1 }
0x16fe   :  { %874 = vsyncpa [#allocation5], 1 }

</bundles_post_ra>
